<compile_context>
chip_gen: v6e
topology: v6e:2x2x1
jax: 0.10.0
libtpu: 0.0.40
codegen_flags: <defaults>
</compile_context>

<pallas_src>
from math import prod

import jax
import jax.numpy as jnp
from jax import lax
from jax.experimental import pallas as pl
from jax.experimental.pallas import tpu as pltpu


def _round_up(n, m):
    return ((n + m - 1) // m) * m


def _cdiv(a, b):
    return -(-a // b)


def _make_kernel(h1_dim, h2_dim, n_actions, out_rows):
    def kernel(x_ref, w1_ref, w2_ref, wh_ref, b_ref, out_ref):
        x = x_ref[...]                                                # (TB, D)
        out_w = wh_ref.shape[1]

        b1 = b_ref[0:1, 0:h1_dim]                                     # (1, H1)
        b2 = b_ref[1:2, 0:h2_dim]                                     # (1, H2)
        bh = b_ref[2:3, 0:out_w]                                      # (1, OW)

        # affine1 + ReLU
        h1 = jnp.dot(x, w1_ref[...], preferred_element_type=jnp.float32) + b1
        h1 = jnp.maximum(h1, 0.0)                                     # (TB, H1)

        # affine2 + ReLU
        h2 = jnp.dot(h1, w2_ref[...], preferred_element_type=jnp.float32) + b2
        h2 = jnp.maximum(h2, 0.0)                                     # (TB, H2)

        # fused action + value head -> (TB, OW):
        #   columns [0, A)  = action logits
        #   column  A       = state value
        #   columns > A     = zero padding
        logits = jnp.dot(h2, wh_ref[...], preferred_element_type=jnp.float32) + bh

        col = lax.broadcasted_iota(jnp.int32, logits.shape, 1)
        is_action = col < n_actions

        # numerically-stable softmax over the action columns only
        act = jnp.where(is_action, logits, -jnp.inf)
        m = jnp.max(act, axis=-1, keepdims=True)
        e = jnp.exp(act - m)                                          # exact 0 on padded cols
        s = jnp.sum(e, axis=-1, keepdims=True)
        # exact reciprocal keeps 1e-5 parity with the f32 reference
        # (use approx=True for the cheap EUP vrcp if that precision is OK).
        probs = e * pl.reciprocal(s, approx=False)

        # place the state value at column A; everything else is probs / zeros
        result = probs + jnp.where(col == n_actions, logits, 0.0)     # (TB, OW)

        # Lane-dense transposed writeback: only the first out_rows (= A+1
        # rounded to 8) feature rows are stored, so HBM writes are
        # (out_rows, TB) instead of a mostly-zero (TB, 128) slab.
        out_ref[...] = result.T[0:out_rows, :]
    return kernel


def _pack_params(params, out_w, bias_w):
    """Pack 8 nn.Linear-style arrays into 4 TPU-friendly operands."""
    w1, b1, w2, b2, wa, ba, wv, bv = [jnp.asarray(p, jnp.float32) for p in params]
    h1_dim = w1.shape[1]
    h2_dim = w2.shape[1]
    n_actions = wa.shape[1]

    # fused (action || value) head weight, zero-padded to lane-dense width
    wh = jnp.zeros((h2_dim, out_w), jnp.float32)
    wh = wh.at[:, :n_actions].set(wa)
    wh = wh.at[:, n_actions:n_actions + 1].set(wv)

    # single bias slab: row 0 = b1, row 1 = b2, row 2 = [ba || bv]
    bias = jnp.zeros((3, bias_w), jnp.float32)
    bias = bias.at[0, :h1_dim].set(b1.reshape(-1))
    bias = bias.at[1, :h2_dim].set(b2.reshape(-1))
    bias = bias.at[2, :n_actions].set(ba.reshape(-1))
    bias = bias.at[2, n_actions].set(bv.reshape(-1)[0])

    return w1, w2, wh, bias


def _choose_tile(b, tile_b):
    """Pick (tile, padded_batch).

    Tiles stay lane-dense (multiples of 128 on the batch/lane axis of the
    transposed output); for batches >= 256 the grid is guaranteed to have
    >= 2 steps so the "parallel" axis can shard across both v7x TensorCores.
    """
    b128 = _round_up(max(b, 1), 128)
    if b128 < 256:
        return b128, b128                       # single small lane-dense step
    half = _round_up(_cdiv(b128, 2), 128)       # guarantee >= 2 grid steps
    tile = max(128, min(tile_b, half))
    return tile, _round_up(b128, tile)


def _vmem_budget_bytes(tile, obs_dim, h1_dim, h2_dim, out_w, bias_w, out_rows):
    """Explicit VMEM budget (double-buffered DMA tiles + weights + live
    intermediates), clamped well below v7x's 64 MiB physical VMEM."""
    f32 = 4
    lane = lambda n: _round_up(n, 128)
    sub = lambda n: _round_up(n, 8)
    tb = lambda r, c: sub(r) * lane(c) * f32
    dma = (tb(tile, obs_dim) + tb(out_rows, tile) + tb(obs_dim, h1_dim)
           + tb(h1_dim, h2_dim) + tb(h2_dim, out_w) + tb(3, bias_w))
    inter = 8 * tb(tile, max(h1_dim, h2_dim, out_w))   # h1/h2/logits/exp/result/transpose
    budget = 2 * dma + inter + (2 << 20)
    return int(min(48 << 20, 2 * budget))


def actor_critic_forward_batched(x, params, *, tile_b=512):
    """x: (B, *obs_shape).  Returns (action_prob (B, A), state_value (B, 1))."""
    obs_dim = jnp.asarray(params[0]).shape[0]
    h1_dim = params[0].shape[1]
    h2_dim = params[2].shape[1]
    n_actions = params[4].shape[1]
    assert n_actions >= 1, "softmax head requires at least one action"

    # head/output widths are decoupled from the hidden sizes
    out_w = _round_up(n_actions + 1, 128)     # lane width of the fused head matmul
    out_rows = _round_up(n_actions + 1, 8)    # sublane rows actually written back
    bias_w = _round_up(max(h1_dim, h2_dim, n_actions + 1), 128)
    w1, w2, wh, bias = _pack_params(params, out_w, bias_w)

    xb = jnp.asarray(x, jnp.float32).reshape(x.shape[0], -1)          # (B, obs_dim)
    b = xb.shape[0]
    assert xb.shape[1] == obs_dim

    tile, b_pad = _choose_tile(b, tile_b)
    if b_pad != b:
        xb = jnp.pad(xb, ((0, b_pad - b), (0, 0)))

    kernel = _make_kernel(h1_dim, h2_dim, n_actions, out_rows)

    cost = pl.CostEstimate(
        flops=2 * b_pad * (obs_dim * h1_dim + h1_dim * h2_dim + h2_dim * out_w),
        transcendentals=b_pad * out_w,
        bytes_accessed=4 * (b_pad * obs_dim + out_rows * b_pad
                            + obs_dim * h1_dim + h1_dim * h2_dim
                            + h2_dim * out_w + 3 * bias_w),
    )

    out = pl.pallas_call(
        kernel,
        out_shape=jax.ShapeDtypeStruct((out_rows, b_pad), jnp.float32),
        grid=(b_pad // tile,),
        in_specs=[
            pl.BlockSpec((tile, obs_dim), lambda i: (i, 0)),          # activations: batch-tiled
            pl.BlockSpec((obs_dim, h1_dim), lambda i: (0, 0)),        # weights stay VMEM-resident
            pl.BlockSpec((h1_dim, h2_dim), lambda i: (0, 0)),
            pl.BlockSpec((h2_dim, out_w), lambda i: (0, 0)),
            pl.BlockSpec((3, bias_w), lambda i: (0, 0)),
        ],
        out_specs=pl.BlockSpec((out_rows, tile), lambda i: (0, i)),   # transposed, lane-dense
        compiler_params=pltpu.CompilerParams(
            dimension_semantics=("parallel",),                        # both TCs on v7x
            vmem_limit_bytes=_vmem_budget_bytes(
                tile, obs_dim, h1_dim, h2_dim, out_w, bias_w, out_rows)),
        cost_estimate=cost,
    )(xb, w1, w2, wh, bias)

    probs = out[:n_actions, :b].T                                     # (B, A)
    values = out[n_actions:n_actions + 1, :b].T                       # (B, 1)
    return probs, values


def actor_critic_forward(x, params):
    """PyTorch-style single-sample forward: x is flattened like `x.flatten()`.
    Returns (action_prob (A,), state_value (1,))."""
    obs_dim = params[0].shape[0]
    xf = jnp.asarray(x, jnp.float32).reshape(1, obs_dim)
    probs, values = actor_critic_forward_batched(xf, params)
    return probs[0], values[0]


def init_params(key, obs_dim, n_actions, hidden=32, hidden2=64):
    """Deterministic init mirroring nn.Linear shapes (stored as (in, out))."""
    def linear(k, fan_in, fan_out):
        kw, kb = jax.random.split(k)
        bound = 1.0 / jnp.sqrt(float(fan_in))
        w = jax.random.uniform(kw, (fan_in, fan_out), jnp.float32, -bound, bound)
        b = jax.random.uniform(kb, (1, fan_out), jnp.float32, -bound, bound)
        return w, b

    k1, k2, k3, k4 = jax.random.split(key, 4)
    w1, b1 = linear(k1, obs_dim, hidden)       # affine1
    w2, b2 = linear(k2, hidden, hidden2)       # affine2
    wa, ba = linear(k3, hidden2, n_actions)    # action_head
    wv, bv = linear(k4, hidden2, 1)            # value_head
    return (w1, b1, w2, b2, wa, ba, wv, bv)


def _reference(xb, params):
    w1, b1, w2, b2, wa, ba, wv, bv = params
    xf = xb.reshape(xb.shape[0], -1)
    h1 = jnp.maximum(xf @ w1 + b1, 0.0)
    h2 = jnp.maximum(h1 @ w2 + b2, 0.0)
    logits = h2 @ wa + ba
    return jax.nn.softmax(logits, axis=-1), h2 @ wv + bv


if __name__ == "__main__":
    key = jax.random.PRNGKey(0)
    k_obs, k_obs2, k_par = jax.random.split(key, 3)

    # small synthetic env: observation_space.shape = (4, 4) -> obs_dim = 16,
    # action_space.n = 4; a small batch of "vectorized env" observations.
    obs_shape = (4, 4)
    n_actions = 4
    obs_dim = prod(obs_shape)
    batch = 8

    params = init_params(k_par, obs_dim, n_actions)
    xb = jax.random.normal(k_obs, (batch,) + obs_shape, dtype=jnp.float32)

    # batched kernel call (single-tile path)
    probs, values = actor_critic_forward_batched(xb, params)
    jax.block_until_ready((probs, values))

    # single-sample (PyTorch forward) path
    p0, v0 = actor_critic_forward(xb[0], params)
    jax.block_until_ready((p0, v0))

    # larger batch to exercise the multi-tile (>= 2 grid steps) path + padding
    batch2 = 300
    xb2 = jax.random.normal(k_obs2, (batch2,) + obs_shape, dtype=jnp.float32)
    probs2, values2 = actor_critic_forward_batched(xb2, params, tile_b=512)
    jax.block_until_ready((probs2, values2))

    # pure-JAX reference checks
    ref_probs, ref_vals = _reference(xb, params)
    ref_probs2, ref_vals2 = _reference(xb2, params)

    assert probs.shape == (batch, n_actions)
    assert values.shape == (batch, 1)
    assert jnp.allclose(probs, ref_probs, atol=1e-5)
    assert jnp.allclose(values, ref_vals, atol=1e-5)
    assert jnp.allclose(jnp.sum(probs, axis=-1), 1.0, atol=1e-5)

    assert p0.shape == (n_actions,)
    assert v0.shape == (1,)
    assert jnp.allclose(p0, ref_probs[0], atol=1e-5)
    assert jnp.allclose(v0, ref_vals[0], atol=1e-5)

    assert probs2.shape == (batch2, n_actions)
    assert values2.shape == (batch2, 1)
    assert jnp.allclose(probs2, ref_probs2, atol=1e-5)
    assert jnp.allclose(values2, ref_vals2, atol=1e-5)
    assert jnp.allclose(jnp.sum(probs2, axis=-1), 1.0, atol=1e-5)

    print("KERNEL_OK")
</pallas_src>

<mosaic_0001>
module attributes {stable_mosaic.version = 11 : i64} {
  func.func @kernel(%arg0: i32, %arg1: memref<128x16xf32, #tpu.memory_space<vmem>>, %arg2: memref<16x32xf32, #tpu.memory_space<vmem>>, %arg3: memref<32x64xf32, #tpu.memory_space<vmem>>, %arg4: memref<64x128xf32, #tpu.memory_space<vmem>>, %arg5: memref<3x128xf32, #tpu.memory_space<vmem>>, %arg6: memref<8x128xf32, #tpu.memory_space<vmem>>) attributes {dimension_semantics = [#tpu.dimension_semantics<parallel>], iteration_bounds = array<i64: 1>, scalar_prefetch = 0 : i64, scratch_operands = 0 : i64, tpu.core_type = #tpu.core_type<tc>, window_params = [{transform_indices = @transform_0, window_bounds = array<i64: 128, 16>}, {pipeline_mode = #tpu.pipeline_mode<synchronous>, transform_indices = @transform_1, window_bounds = array<i64: 16, 32>}, {pipeline_mode = #tpu.pipeline_mode<synchronous>, transform_indices = @transform_2, window_bounds = array<i64: 32, 64>}, {pipeline_mode = #tpu.pipeline_mode<synchronous>, transform_indices = @transform_3, window_bounds = array<i64: 64, 128>}, {pipeline_mode = #tpu.pipeline_mode<synchronous>, transform_indices = @transform_4, window_bounds = array<i64: 3, 128>}, {transform_indices = @transform_5, window_bounds = array<i64: 8, 128>}]} {
    %c0 = arith.constant 0 : index
    %c0_0 = arith.constant 0 : index
    %0 = vector.load %arg1[%c0, %c0_0] : memref<128x16xf32, #tpu.memory_space<vmem>>, vector<128x16xf32>
    %c0_1 = arith.constant 0 : index
    %c0_2 = arith.constant 0 : index
    %1 = vector.load %arg5[%c0_1, %c0_2] : memref<3x128xf32, #tpu.memory_space<vmem>>, vector<1x32xf32>
    %c1 = arith.constant 1 : index
    %c0_3 = arith.constant 0 : index
    %2 = vector.load %arg5[%c1, %c0_3] : memref<3x128xf32, #tpu.memory_space<vmem>>, vector<1x64xf32>
    %c2 = arith.constant 2 : index
    %c0_4 = arith.constant 0 : index
    %3 = vector.load %arg5[%c2, %c0_4] : memref<3x128xf32, #tpu.memory_space<vmem>>, vector<1x128xf32>
    %c0_5 = arith.constant 0 : index
    %c0_6 = arith.constant 0 : index
    %4 = vector.load %arg2[%c0_5, %c0_6] : memref<16x32xf32, #tpu.memory_space<vmem>>, vector<16x32xf32>
    %cst = arith.constant dense<0.000000e+00> : vector<128x32xf32>
    %5 = tpu.matmul %0, %4, %cst {dimension_numbers = #tpu.dot_dimension_numbers<[1], [0], [0], [1], [0, 0, 1, 1], [], []>} : vector<128x16xf32>, vector<16x32xf32>, vector<128x32xf32> -> vector<128x32xf32>
    %6 = vector.broadcast %1 : vector<1x32xf32> to vector<128x32xf32>
    %7 = arith.addf %5, %6 : vector<128x32xf32>
    %cst_7 = arith.constant 0.000000e+00 : f32
    %8 = vector.broadcast %cst_7 : f32 to vector<128x32xf32>
    %9 = arith.maximumf %7, %8 : vector<128x32xf32>
    %c0_8 = arith.constant 0 : index
    %c0_9 = arith.constant 0 : index
    %10 = vector.load %arg3[%c0_8, %c0_9] : memref<32x64xf32, #tpu.memory_space<vmem>>, vector<32x64xf32>
    %cst_10 = arith.constant dense<0.000000e+00> : vector<128x64xf32>
    %11 = tpu.matmul %9, %10, %cst_10 {dimension_numbers = #tpu.dot_dimension_numbers<[1], [0], [0], [1], [0, 0, 1, 1], [], []>} : vector<128x32xf32>, vector<32x64xf32>, vector<128x64xf32> -> vector<128x64xf32>
    %12 = vector.broadcast %2 : vector<1x64xf32> to vector<128x64xf32>
    %13 = arith.addf %11, %12 : vector<128x64xf32>
    %cst_11 = arith.constant 0.000000e+00 : f32
    %14 = vector.broadcast %cst_11 : f32 to vector<128x64xf32>
    %15 = arith.maximumf %13, %14 : vector<128x64xf32>
    %c0_12 = arith.constant 0 : index
    %c0_13 = arith.constant 0 : index
    %16 = vector.load %arg4[%c0_12, %c0_13] : memref<64x128xf32, #tpu.memory_space<vmem>>, vector<64x128xf32>
    %cst_14 = arith.constant dense<0.000000e+00> : vector<128x128xf32>
    %17 = tpu.matmul %15, %16, %cst_14 {dimension_numbers = #tpu.dot_dimension_numbers<[1], [0], [0], [1], [0, 0, 1, 1], [], []>} : vector<128x64xf32>, vector<64x128xf32>, vector<128x128xf32> -> vector<128x128xf32>
    %18 = vector.broadcast %3 : vector<1x128xf32> to vector<128x128xf32>
    %19 = arith.addf %17, %18 : vector<128x128xf32>
    %20 = tpu.iota {dimensions = array<i32: 1>} : vector<128x128xi32>
    %c4_i32 = arith.constant 4 : i32
    %21 = vector.broadcast %c4_i32 : i32 to vector<128x128xi32>
    %22 = arith.cmpi slt, %20, %21 : vector<128x128xi32>
    %cst_15 = arith.constant 0xFF800000 : f32
    %23 = vector.broadcast %cst_15 : f32 to vector<128x128xf32>
    %24 = arith.select %22, %19, %23 : vector<128x128xi1>, vector<128x128xf32>
    %cst_16 = arith.constant dense<0xFF800000> : vector<128xf32>
    %25 = vector.multi_reduction <maximumf>, %24, %cst_16 [1] : vector<128x128xf32> to vector<128xf32>
    %26 = vector.shape_cast %25 : vector<128xf32> to vector<128x1xf32>
    %27 = vector.broadcast %26 : vector<128x1xf32> to vector<128x128xf32>
    %28 = arith.subf %24, %27 : vector<128x128xf32>
    %29 = math.exp %28 : vector<128x128xf32>
    %cst_17 = arith.constant dense<0.000000e+00> : vector<128xf32>
    %30 = vector.multi_reduction <add>, %29, %cst_17 [1] : vector<128x128xf32> to vector<128xf32>
    %31 = vector.shape_cast %30 : vector<128xf32> to vector<128x1xf32>
    %32 = tpu.reciprocal %31 : vector<128x1xf32> -> vector<128x1xf32>
    %33 = vector.broadcast %32 : vector<128x1xf32> to vector<128x128xf32>
    %34 = arith.mulf %29, %33 : vector<128x128xf32>
    %c4_i32_18 = arith.constant 4 : i32
    %35 = vector.broadcast %c4_i32_18 : i32 to vector<128x128xi32>
    %36 = arith.cmpi eq, %20, %35 : vector<128x128xi32>
    %cst_19 = arith.constant 0.000000e+00 : f32
    %37 = vector.broadcast %cst_19 : f32 to vector<128x128xf32>
    %38 = arith.select %36, %19, %37 : vector<128x128xi1>, vector<128x128xf32>
    %39 = arith.addf %34, %38 : vector<128x128xf32>
    %40 = tpu.transpose %39, [1, 0] : vector<128x128xf32> -> vector<128x128xf32>
    %41 = vector.extract_strided_slice %40 {offsets = [0, 0], sizes = [8, 128], strides = [1, 1]} : vector<128x128xf32> to vector<8x128xf32>
    %c0_20 = arith.constant 0 : index
    %c0_21 = arith.constant 0 : index
    %42 = vector.load %arg6[%c0_20, %c0_21] : memref<8x128xf32, #tpu.memory_space<vmem>>, vector<8x128xf32>
    tpu.vector_store %arg6[%c0_20, %c0_21], %41 {strides = array<i32>} : memref<8x128xf32, #tpu.memory_space<vmem>>, vector<8x128xf32>,
    return
  }
  func.func @transform_0(%arg0: i32) -> (i32, i32) {
    %c0_i32 = arith.constant 0 : i32
    %c0_i32_0 = arith.constant 0 : i32
    return %arg0, %c0_i32 : i32, i32
  }
  func.func @transform_1(%arg0: i32) -> (i32, i32) {
    %c0_i32 = arith.constant 0 : i32
    %c0_i32_0 = arith.constant 0 : i32
    %c0_i32_1 = arith.constant 0 : i32
    return %c0_i32, %c0_i32_0 : i32, i32
  }
  func.func @transform_2(%arg0: i32) -> (i32, i32) {
    %c0_i32 = arith.constant 0 : i32
    %c0_i32_0 = arith.constant 0 : i32
    %c0_i32_1 = arith.constant 0 : i32
    return %c0_i32, %c0_i32_0 : i32, i32
  }
  func.func @transform_3(%arg0: i32) -> (i32, i32) {
    %c0_i32 = arith.constant 0 : i32
    %c0_i32_0 = arith.constant 0 : i32
    %c0_i32_1 = arith.constant 0 : i32
    return %c0_i32, %c0_i32_0 : i32, i32
  }
  func.func @transform_4(%arg0: i32) -> (i32, i32) {
    %c0_i32 = arith.constant 0 : i32
    %c0_i32_0 = arith.constant 0 : i32
    %c0_i32_1 = arith.constant 0 : i32
    return %c0_i32, %c0_i32_0 : i32, i32
  }
  func.func @transform_5(%arg0: i32) -> (i32, i32) {
    %c0_i32 = arith.constant 0 : i32
    %c0_i32_0 = arith.constant 0 : i32
    return %c0_i32, %arg0 : i32, i32
  }
}

</mosaic_0001>

<bundles_post_ra>
// kernel: tpu_custom_call.1
= control target key start
LH: loop header
LB: loop body
LE: loop exit
PB: predicated region body
PF: predicated region fallthrough
CT: control target
= control target key end

     0   :  { %vm46_vm0 = vcmask 130048   ;;  %s1670_s0 = inlined_call_operand.vmem [shape: f32[128,16], index: 0, kind: input, shape index: {}]   ;;  %s1671_s1 = inlined_call_operand.vmem [shape: f32[16,32], index: 1, kind: input, shape index: {}]   ;;  %s1672_s2 = inlined_call_operand.vmem [shape: f32[32,64], index: 2, kind: input, shape index: {}]   ;;  %s1673_s3 = inlined_call_operand.vmem [shape: f32[64,128], index: 3, kind: input, shape index: {}]   ;;  %s1674_s4 = inlined_call_operand.vmem [shape: f32[3,128], index: 4, kind: input, shape index: {}]   ;;  %s1675_s5 = inlined_call_operand.hbm [shape: f32[8,128], index: 5, kind: output, shape index: {}]  }
   0x1   :  { %v41_v0 = vld [vmem:[%s1671_s1 + $0x8] sm:$0xff]  ;;  %v40_v1 = vld [vmem:[%s1671_s1] sm:$0xff]  ;;  %v23_v4 = vld [vmem:[%s1670_s0 + $0x10] sm:$0xff] }
   0x2   :  { %v21_v2 = vld [vmem:[%s1670_s0] sm:$0xff]  ;;  %1036 = vmatprep.subr.mxu0 %v41_v0  ;;  %v22_v3 = vld [vmem:[%s1670_s0 + $0x8] sm:$0xff]  ;;  %1136 = vmatprep.subr.mxu1 %v41_v0  ;;  %v31_v7 = vld [vmem:[%s1670_s0 + $0x50] sm:$0xff] }
   0x3   :  { %1040 = vmatprep.mubr.msk.f32.mxu0 %vm46_vm0, %v21_v2  ;;  %1037 = vmatpush3.msra.mxu0 %v41_v0  ;;  %v29_v5 = vld [vmem:[%s1670_s0 + $0x40] sm:$0xff]  ;;  %v30_v6 = vld [vmem:[%s1670_s0 + $0x48] sm:$0xff]  ;;  %v24_v8 = vld [vmem:[%s1670_s0 + $0x18] sm:$0xff] }
   0x4   :  { %1038 = vmatprep.subr.mxu0 %v40_v1  ;;  %1138 = vmatpush3.msra.mxu1 %v41_v0  ;;  %v259_v9 = vld [vmem:[%s1672_s2 + $0x18] sm:$0xff]  ;;  %v258_v10 = vld [vmem:[%s1672_s2 + $0x10] sm:$0xff]  ;;  %v25_v11 = vld [vmem:[%s1670_s0 + $0x20] sm:$0xff] }
   0x5   :  { %1039 = vmatpush3.msra.mxu0 %v40_v1  ;;  %1137 = vmatprep.subr.mxu1 %v40_v1 }
   0x6   :  { %1041 = vmatmul.mubr.msk.f32.vlgmr.msra.gmra.mxu0 %vm46_vm0, %v22_v3  ;;  %1139 = vmatpush3.msra.mxu1 %v40_v1 }
   0x7   :  { %1043 = vmatprep.mubr.msk.f32.mxu0 %vm46_vm0, %v23_v4  ;;  %1052 = vmatprep.mubr.msk.f32.mxu1 %vm46_vm0, %v29_v5 }
   0x8   :  { %1053 = vmatmul.mubr.msk.f32.vlgmr.msra.gmra.mxu1 %vm46_vm0, %v30_v6  ;;  %1064 = vmatprep.subr.mxu1 %v259_v9 }
   0x9   :  { %10 = vsyncpa [#allocation3], 0  ;;  %1055 = vmatprep.mubr.msk.f32.mxu1 %vm46_vm0, %v31_v7  ;;  %v32_v12 = vld [vmem:[%s1670_s0 + $0x58] sm:$0xff]  ;;  %1065 = vmatpush3.msra.mxu1 %v259_v9  ;;  %v257_v13 = vld [vmem:[%s1672_s2 + $0x8] sm:$0xff]  ;;  %vm264_vm1 = vcmask 261120   ;;  %vm486_vm2 = vcmask 523264  }
   0xa   :  { %1044 = vmatmul.mubr.msk.f32.gmra.mxu0 %vm46_vm0, %v24_v8  ;;  %v33_v14 = vld [vmem:[%s1670_s0 + $0x60] sm:$0xff]  ;;  %1066 = vmatprep.subr.mxu1 %v258_v10  ;;  %v26_v15 = vld [vmem:[%s1670_s0 + $0x28] sm:$0xff]  ;;  %v27_v16 = vld [vmem:[%s1670_s0 + $0x30] sm:$0xff] }
   0xb   :  { %1046 = vmatprep.mubr.msk.f32.mxu0 %vm46_vm0, %v25_v11  ;;  %1067 = vmatpush3.msra.mxu1 %v258_v10  ;;  %v34_v17 = vld [vmem:[%s1670_s0 + $0x68] sm:$0xff]  ;;  %v35_v18 = vld [vmem:[%s1670_s0 + $0x70] sm:$0xff]  ;;  %v28_v19 = vld [vmem:[%s1670_s0 + $0x38] sm:$0xff] }
   0xc   :  { %1056 = vmatmul.mubr.msk.f32.gmra.mxu1 %vm46_vm0, %v32_v12  ;;  %1068 = vmatprep.subr.mxu1 %v257_v13  ;;  %v36_v20 = vld [vmem:[%s1670_s0 + $0x78] sm:$0xff]  ;;  %v256_v21 = vld [vmem:[%s1672_s2] sm:$0xff]  ;;  %v480_v23 = vld [vmem:[%s1673_s3 + $0x30] sm:$0xff] }
   0xd   :  { %1058 = vmatprep.mubr.msk.f32.mxu1 %vm46_vm0, %v33_v14  ;;  %1069 = vmatpush3.msra.mxu1 %v257_v13  ;;  %v481_v22 = vld [vmem:[%s1673_s3 + $0x38] sm:$0xff]  ;;  %v479_v24 = vld [vmem:[%s1673_s3 + $0x28] sm:$0xff]  ;;  %v478_v25 = vld [vmem:[%s1673_s3 + $0x20] sm:$0xff] }
   0xe   :  { %1047 = vmatmul.mubr.msk.f32.gmra.mxu0 %vm46_vm0, %v26_v15  ;;  %1070 = vmatprep.subr.mxu1 %v256_v21  ;;  %v477_v26 = vld [vmem:[%s1673_s3 + $0x18] sm:$0xff]  ;;  %v923_v27 = vld [vmem:[%s1674_s4] ss:$0 sm:$0xff]  ;;  %v476_v12 = vld [vmem:[%s1673_s3 + $0x10] sm:$0xff] }
   0xf   :  { %1049 = vmatprep.mubr.msk.f32.mxu0 %vm46_vm0, %v27_v16  ;;  %1071 = vmatpush3.msra.mxu1 %v256_v21  ;;  %v475_v13 = vld [vmem:[%s1673_s3 + $0x8] sm:$0xff]  ;;  %v474_v14 = vld [vmem:[%s1673_s3] sm:$0xff] }
  0x10   :  { %1059 = vmatmul.mubr.msk.f32.gmra.mxu1 %vm46_vm0, %v34_v17  ;;  %1096 = vmatprep.subr.mxu0 %v481_v22  ;;  %v940_v15 = vld [vmem:[%s1674_s4 + $0x1] ss:$0 sm:$0xff] }
  0x11   :  { %1061 = vmatprep.mubr.msk.f32.mxu1 %vm46_vm0, %v35_v18  ;;  %1097 = vmatpush3.msra.mxu0 %v481_v22 }
  0x12   :  { %1050 = vmatmul.mubr.msk.f32.gmra.mxu0 %vm46_vm0, %v28_v19  ;;  %1098 = vmatprep.subr.mxu0 %v480_v23 }
  0x13   :  { %1099 = vmatpush3.msra.mxu0 %v480_v23 }
  0x14   :  { %1062 = vmatmul.mubr.msk.f32.gmra.mxu1 %vm46_vm0, %v36_v20  ;;  %1100 = vmatprep.subr.mxu0 %v479_v24 }
  0x15   :  { %1101 = vmatpush3.msra.mxu0 %v479_v24 }
  0x16   :  { %1102 = vmatprep.subr.mxu0 %v478_v25 }
  0x17   :  { %1103 = vmatpush3.msra.mxu0 %v478_v25 }
  0x18   :  { %1104 = vmatprep.subr.mxu0 %v477_v26 }
  0x19   :  { %1105 = vmatpush3.msra.mxu0 %v477_v26 }
  0x1a   :  { %1106 = vmatprep.subr.mxu0 %v476_v12 }
  0x1b   :  { %1107 = vmatpush3.msra.mxu0 %v476_v12 }
  0x1c   :  { %1108 = vmatprep.subr.mxu0 %v475_v13 }
  0x1d   :  { %1109 = vmatpush3.msra.mxu0 %v475_v13 }
  0x1e   :  { %1110 = vmatprep.subr.mxu0 %v474_v14 }
  0x1f   :  { %1111 = vmatpush3.msra.mxu0 %v474_v14 }
  0xc6   :  { %v1042_v28 = vpop.f32.mrf.mxu0 }
  0xc7   :  { %v167_v29 = vadd.f32 %v1042_v28, %v923_v27 }
  0xc8   :  { %v161_v30 = vpop.f32.mrf.mxu0  ;;  %v1054_v31 = vpop.f32.mrf.mxu1 }
  0xc9   :  { %v162_v32 = vadd.f32 %v923_v27, %v161_v30  ;;  %v241_v37 = vmax.f32 %v167_v29, 0.0  ;;  %v207_v58 = vadd.f32 %v1054_v31, %v923_v27 }
  0xca   :  { %v1045_v33 = vpop.f32.mrf.mxu0  ;;  %v201_v34 = vpop.f32.mrf.mxu1 }
  0xcb   :  { %v240_v35 = vmax.f32 %v162_v32, 0.0  ;;  %v177_v36 = vadd.f32 %v1045_v33, %v923_v27  ;;  %v202_v53 = vadd.f32 %v923_v27, %v201_v34  ;;  %v249_v63 = vmax.f32 %v207_v58, 0.0 }
  0xcc   :  { %v171_v38 = vpop.f32.mrf.mxu0  ;;  %v1057_v39 = vpop.f32.mrf.mxu1 }
  0xcd   :  { %v172_v40 = vadd.f32 %v923_v27, %v171_v38  ;;  %1072 = vmatprep.mubr.msk.f32.mxu1 %vm264_vm1, %v240_v35  ;;  %v243_v41 = vmax.f32 %v177_v36, 0.0  ;;  %v248_v60 = vmax.f32 %v202_v53, 0.0  ;;  %v217_v0 = vadd.f32 %v1057_v39, %v923_v27 }
  0xce   :  { %v1048_v42 = vpop.f32.mrf.mxu0  ;;  %1073 = vmatmul.mubr.msk.f32.vlgmr.msra.gmra.mxu1 %vm264_vm1, %v241_v37  ;;  %v211_v43 = vpop.f32.mrf.mxu1 }
  0xcf   :  { %v242_v44 = vmax.f32 %v172_v40, 0.0  ;;  %v187_v45 = vadd.f32 %v1048_v42, %v923_v27  ;;  %v212_v61 = vadd.f32 %v923_v27, %v211_v43  ;;  %v251_v4 = vmax.f32 %v217_v0, 0.0 }
  0xd0   :  { %v181_v46 = vpop.f32.mrf.mxu0  ;;  %v1060_v47 = vpop.f32.mrf.mxu1  ;;  %v680_v0 = vlaneseq }
  0xd1   :  { %v182_v48 = vadd.f32 %v923_v27, %v181_v46  ;;  %1075 = vmatprep.mubr.msk.f32.mxu1 %vm264_vm1, %v242_v44  ;;  %v245_v49 = vmax.f32 %v187_v45, 0.0  ;;  %v250_v1 = vmax.f32 %v212_v61, 0.0  ;;  %v227_v5 = vadd.f32 %v1060_v47, %v923_v27 }
  0xd2   :  { %v1051_v50 = vpop.f32.mrf.mxu0  ;;  %1076 = vmatmul.mubr.msk.f32.gmra.mxu1 %vm264_vm1, %v243_v41  ;;  %v221_v55 = vpop.f32.mrf.mxu1 }
  0xd3   :  { %v244_v51 = vmax.f32 %v182_v48, 0.0  ;;  %v197_v52 = vadd.f32 %v1051_v50, %v923_v27  ;;  %v222_v2 = vadd.f32 %v923_v27, %v221_v55  ;;  %v253_v8 = vmax.f32 %v227_v5, 0.0 }
  0xd4   :  { %v191_v54 = vpop.f32.mrf.mxu0  ;;  %v1063_v62 = vpop.f32.mrf.mxu1 }
  0xd5   :  { %v192_v56 = vadd.f32 %v923_v27, %v191_v54  ;;  %1078 = vmatprep.mubr.msk.f32.mxu1 %vm264_vm1, %v244_v51  ;;  %v247_v57 = vmax.f32 %v197_v52, 0.0  ;;  %v252_v6 = vmax.f32 %v222_v2, 0.0  ;;  %v237_v9 = vadd.f32 %v1063_v62, %v923_v27  ;;  %v1407_v2 = vld [vmem:[%s1674_s4 + $0x2] ss:$0 sm:$0xff]  ;;  %s1227_s4 = smov [#allocation2]  }
  0xd6   :  { %1079 = vmatmul.mubr.msk.f32.gmra.mxu1 %vm264_vm1, %v245_v49  ;;  %v231_v3 = vpop.f32.mrf.mxu1  ;;  %s915_s28 = sshll.u32 %s1227_s4, 4  ;;  %s916_s28 = int_to_ptr.vmem [resolvable:$true] %s915_s28 }
  0xd7   :  { %v246_v59 = vmax.f32 %v192_v56, 0.0  ;;  %v232_v7 = vadd.f32 %v923_v27, %v231_v3  ;;  %v255_v11 = vmax.f32 %v237_v9, 0.0  ;;  %s1205_s29 = scalar_lea.vmem %s916_s28, 128  ;;  %p1210_p1 = scmp.lt.s32.totalorder %s916_s28, %s916_s28 }
  0xd8   :  { %p1206_p0 = scmp.ne.s32.totalorder %s916_s28, %s1205_s29  ;;  %p1211_p2 = scmp.lt.s32.totalorder %s1205_s29, %s1205_s29 }
  0xd9   :  { %1081 = vmatprep.mubr.msk.f32.mxu1 %vm264_vm1, %v246_v59  ;;  %v254_v10 = vmax.f32 %v232_v7, 0.0 }
  0xda   :  { %1082 = vmatmul.mubr.msk.f32.gmra.mxu1 %vm264_vm1, %v247_v57  ;;  %p1212_p3 = por %p1211_p2, %p1210_p1 }
  0xdb   :  { %1084 = vmatprep.mubr.msk.f32.mxu1 %vm264_vm1, %v248_v60 }
  0xdc   :  { %p1213_p4 = pnand %p1212_p3, %p1206_p0 }
  0xde   :  { %1085 = vmatmul.mubr.msk.f32.gmra.mxu1 %vm264_vm1, %v249_v63 }
  0xdf   :  { %1087 = vmatprep.mubr.msk.f32.mxu1 %vm264_vm1, %v250_v1  ;;  %v1402_v1 = vand.u32 127, %v680_v0 }
  0xe1   :  { %vm843_vm3 = vcmp.eq.s32.totalorder %v1402_v1, 4  ;;  %vm682_vm4 = vcmp.lt.s32.totalorder %v1402_v1, 4 }
  0xe2   :  { %1088 = vmatmul.mubr.msk.f32.gmra.mxu1 %vm264_vm1, %v251_v4 }
  0xe3   :  { %1090 = vmatprep.mubr.msk.f32.mxu1 %vm264_vm1, %v252_v6 }
  0xe6   :  { %1091 = vmatmul.mubr.msk.f32.gmra.mxu1 %vm264_vm1, %v253_v8 }
  0xe7   :  { %1093 = vmatprep.mubr.msk.f32.mxu1 %vm264_vm1, %v254_v10 }
  0xea   :  { %1094 = vmatmul.mubr.msk.f32.gmra.mxu1 %vm264_vm1, %v255_v11 }
 0x18e   :  { %v1074_v16 = vpop.f32.mrf.mxu1 }
 0x18f   :  { %v385_v17 = vadd.f32 %v1074_v16, %v940_v15 }
 0x190   :  { %v379_v18 = vpop.f32.mrf.mxu1 }
 0x191   :  { %v380_v19 = vadd.f32 %v940_v15, %v379_v18  ;;  %v459_v22 = vmax.f32 %v385_v17, 0.0 }
 0x192   :  { %v1077_v20 = vpop.f32.mrf.mxu1 }
 0x193   :  { %v458_v21 = vmax.f32 %v380_v19, 0.0  ;;  %v395_v23 = vadd.f32 %v1077_v20, %v940_v15 }
 0x194   :  { %v389_v24 = vpop.f32.mrf.mxu1 }
 0x195   :  { %v390_v25 = vadd.f32 %v940_v15, %v389_v24  ;;  %1112 = vmatprep.mubr.msk.f32.mxu0 %vm486_vm2, %v458_v21  ;;  %v461_v29 = vmax.f32 %v395_v23, 0.0 }
 0x196   :  { %v1080_v26 = vpop.f32.mrf.mxu1  ;;  %1113 = vmatmul.mubr.msk.f32.vlgmr.msra.gmra.mxu0 %vm486_vm2, %v459_v22 }
 0x197   :  { %v460_v27 = vmax.f32 %v390_v25, 0.0  ;;  %v405_v28 = vadd.f32 %v1080_v26, %v940_v15 }
 0x198   :  { %v399_v30 = vpop.f32.mrf.mxu1 }
 0x199   :  { %v400_v31 = vadd.f32 %v940_v15, %v399_v30  ;;  %1115 = vmatprep.mubr.msk.f32.mxu0 %vm486_vm2, %v460_v27  ;;  %v463_v32 = vmax.f32 %v405_v28, 0.0 }
 0x19a   :  { %v1083_v33 = vpop.f32.mrf.mxu1  ;;  %1116 = vmatmul.mubr.msk.f32.gmra.mxu0 %vm486_vm2, %v461_v29 }
 0x19b   :  { %v462_v34 = vmax.f32 %v400_v31, 0.0  ;;  %v415_v35 = vadd.f32 %v1083_v33, %v940_v15 }
 0x19c   :  { %v409_v36 = vpop.f32.mrf.mxu1 }
 0x19d   :  { %v410_v37 = vadd.f32 %v940_v15, %v409_v36  ;;  %1118 = vmatprep.mubr.msk.f32.mxu0 %vm486_vm2, %v462_v34  ;;  %v465_v38 = vmax.f32 %v415_v35, 0.0 }
 0x19e   :  { %v1086_v39 = vpop.f32.mrf.mxu1  ;;  %1119 = vmatmul.mubr.msk.f32.gmra.mxu0 %vm486_vm2, %v463_v32 }
 0x19f   :  { %v464_v40 = vmax.f32 %v410_v37, 0.0  ;;  %v425_v41 = vadd.f32 %v1086_v39, %v940_v15 }
 0x1a0   :  { %v419_v42 = vpop.f32.mrf.mxu1 }
 0x1a1   :  { %v420_v43 = vadd.f32 %v940_v15, %v419_v42  ;;  %1121 = vmatprep.mubr.msk.f32.mxu0 %vm486_vm2, %v464_v40  ;;  %v467_v44 = vmax.f32 %v425_v41, 0.0 }
 0x1a2   :  { %v1089_v45 = vpop.f32.mrf.mxu1  ;;  %1122 = vmatmul.mubr.msk.f32.gmra.mxu0 %vm486_vm2, %v465_v38 }
 0x1a3   :  { %v466_v46 = vmax.f32 %v420_v43, 0.0  ;;  %v435_v47 = vadd.f32 %v1089_v45, %v940_v15 }
 0x1a4   :  { %v429_v48 = vpop.f32.mrf.mxu1 }
 0x1a5   :  { %v430_v49 = vadd.f32 %v940_v15, %v429_v48  ;;  %1124 = vmatprep.mubr.msk.f32.mxu0 %vm486_vm2, %v466_v46  ;;  %v469_v50 = vmax.f32 %v435_v47, 0.0 }
 0x1a6   :  { %v1092_v51 = vpop.f32.mrf.mxu1  ;;  %1125 = vmatmul.mubr.msk.f32.gmra.mxu0 %vm486_vm2, %v467_v44 }
 0x1a7   :  { %v468_v52 = vmax.f32 %v430_v49, 0.0  ;;  %v445_v53 = vadd.f32 %v1092_v51, %v940_v15 }
 0x1a8   :  { %v439_v54 = vpop.f32.mrf.mxu1 }
 0x1a9   :  { %v440_v55 = vadd.f32 %v940_v15, %v439_v54  ;;  %1127 = vmatprep.mubr.msk.f32.mxu0 %vm486_vm2, %v468_v52  ;;  %v471_v56 = vmax.f32 %v445_v53, 0.0 }
 0x1aa   :  { %v1095_v57 = vpop.f32.mrf.mxu1  ;;  %1128 = vmatmul.mubr.msk.f32.gmra.mxu0 %vm486_vm2, %v469_v50 }
 0x1ab   :  { %v470_v58 = vmax.f32 %v440_v55, 0.0  ;;  %v455_v59 = vadd.f32 %v1095_v57, %v940_v15 }
 0x1ac   :  { %v449_v60 = vpop.f32.mrf.mxu1 }
 0x1ad   :  { %v450_v61 = vadd.f32 %v940_v15, %v449_v60  ;;  %1130 = vmatprep.mubr.msk.f32.mxu0 %vm486_vm2, %v470_v58  ;;  %v473_v62 = vmax.f32 %v455_v59, 0.0 }
 0x1ae   :  { %1131 = vmatmul.mubr.msk.f32.gmra.mxu0 %vm486_vm2, %v471_v56 }
 0x1af   :  { %v472_v63 = vmax.f32 %v450_v61, 0.0 }
 0x1b1   :  { %1133 = vmatprep.mubr.msk.f32.mxu0 %vm486_vm2, %v472_v63 }
 0x1b2   :  { %1134 = vmatmul.mubr.msk.f32.gmra.mxu0 %vm486_vm2, %v473_v62 }
 0x256   :  { %v1114_v3 = vpop.f32.mrf.mxu0 }
 0x257   :  { %v607_v4 = vadd.f32 %v1114_v3, %v1407_v2 }
 0x258   :  { %v601_v5 = vpop.f32.mrf.mxu0 }
 0x259   :  { %v1413_v6 = vsel %vm843_vm3, %v607_v4, 0.0  ;;  %v602_v7 = vadd.f32 %v1407_v2, %v601_v5  ;;  %v1443_v19 = vsel %vm682_vm4, %v607_v4, -inf }
 0x25a   :  { %v1117_v8 = vpop.f32.mrf.mxu0 }
 0x25b   :  { %v617_v9 = vadd.f32 %v1117_v8, %v1407_v2  ;;  %v1420_v10 = vsel %vm682_vm4, %v602_v7, -inf  ;;  %v1424_v11 = vsel %vm843_vm3, %v602_v7, 0.0 }
 0x25c   :  { %v611_v12 = vpop.f32.mrf.mxu0  ;;  %699 = vmax.xlane.f32.xlu0 %v1420_v10 }
 0x25d   :  { %v1429_v13 = vsel %vm843_vm3, %v617_v9, 0.0  ;;  %v612_v14 = vadd.f32 %v1407_v2, %v611_v12  ;;  %v1459_v26 = vsel %vm682_vm4, %v617_v9, -inf }
 0x25e   :  { %v1120_v15 = vpop.f32.mrf.mxu0 }
 0x25f   :  { %v1434_v16 = vsel %vm843_vm3, %v612_v14, 0.0  ;;  %v627_v17 = vadd.f32 %v1120_v15, %v1407_v2  ;;  %v1439_v18 = vsel %vm682_vm4, %v612_v14, -inf }
 0x260   :  { %v621_v20 = vpop.f32.mrf.mxu0  ;;  %703 = vmax.xlane.f32.xlu1 %v1439_v18  ;;  %701 = vmax.xlane.f32.xlu0 %v1443_v19 }
 0x261   :  { %v1449_v21 = vsel %vm843_vm3, %v627_v17, 0.0  ;;  %v622_v22 = vadd.f32 %v1407_v2, %v621_v20  ;;  %v1479_v34 = vsel %vm682_vm4, %v627_v17, -inf }
 0x262   :  { %v1123_v23 = vpop.f32.mrf.mxu0 }
 0x263   :  { %v1454_v24 = vsel %vm843_vm3, %v622_v22, 0.0  ;;  %v637_v25 = vadd.f32 %v1123_v23, %v1407_v2  ;;  %v1463_v27 = vsel %vm682_vm4, %v622_v22, -inf }
 0x264   :  { %v631_v28 = vpop.f32.mrf.mxu0  ;;  %705 = vmax.xlane.f32.xlu1 %v1459_v26  ;;  %707 = vmax.xlane.f32.xlu0 %v1463_v27 }
 0x265   :  { %v1469_v29 = vsel %vm843_vm3, %v637_v25, 0.0  ;;  %v632_v30 = vadd.f32 %v1407_v2, %v631_v28  ;;  %v1494_v39 = vsel %vm682_vm4, %v637_v25, -inf }
 0x266   :  { %v1126_v31 = vpop.f32.mrf.mxu0 }
 0x267   :  { %v1474_v32 = vsel %vm843_vm3, %v632_v30, 0.0  ;;  %v647_v33 = vadd.f32 %v1126_v31, %v1407_v2  ;;  %v1483_v35 = vsel %vm682_vm4, %v632_v30, -inf }
 0x268   :  { %v641_v36 = vpop.f32.mrf.mxu0  ;;  %709 = vmax.xlane.f32.xlu1 %v1479_v34  ;;  %711 = vmax.xlane.f32.xlu0 %v1483_v35 }
 0x269   :  { %v1489_v37 = vsel %vm843_vm3, %v647_v33, 0.0  ;;  %v642_v38 = vadd.f32 %v1407_v2, %v641_v36  ;;  %v1514_v47 = vsel %vm682_vm4, %v647_v33, -inf }
 0x26a   :  { %v1129_v40 = vpop.f32.mrf.mxu0 }
 0x26b   :  { %v1498_v41 = vsel %vm843_vm3, %v642_v38, 0.0  ;;  %v657_v42 = vadd.f32 %v1129_v40, %v1407_v2  ;;  %v1503_v43 = vsel %vm682_vm4, %v642_v38, -inf }
 0x26c   :  { %v651_v44 = vpop.f32.mrf.mxu0  ;;  %713 = vmax.xlane.f32.xlu1 %v1494_v39  ;;  %715 = vmax.xlane.f32.xlu0 %v1503_v43 }
 0x26d   :  { %v1509_v45 = vsel %vm843_vm3, %v657_v42, 0.0  ;;  %v652_v46 = vadd.f32 %v1407_v2, %v651_v44  ;;  %v1534_v55 = vsel %vm682_vm4, %v657_v42, -inf }
 0x26e   :  { %v1132_v48 = vpop.f32.mrf.mxu0 }
 0x26f   :  { %v1518_v49 = vsel %vm843_vm3, %v652_v46, 0.0  ;;  %v667_v50 = vadd.f32 %v1132_v48, %v1407_v2  ;;  %v1523_v51 = vsel %vm682_vm4, %v652_v46, -inf }
 0x270   :  { %v661_v52 = vpop.f32.mrf.mxu0  ;;  %717 = vmax.xlane.f32.xlu1 %v1514_v47  ;;  %719 = vmax.xlane.f32.xlu0 %v1523_v51 }
 0x271   :  { %v1529_v53 = vsel %vm843_vm3, %v667_v50, 0.0  ;;  %v662_v54 = vadd.f32 %v1407_v2, %v661_v52  ;;  %v1554_v63 = vsel %vm682_vm4, %v667_v50, -inf }
 0x272   :  { %v1135_v56 = vpop.f32.mrf.mxu0 }
 0x273   :  { %v1538_v57 = vsel %vm843_vm3, %v662_v54, 0.0  ;;  %v677_v58 = vadd.f32 %v1135_v56, %v1407_v2  ;;  %v1543_v59 = vsel %vm682_vm4, %v662_v54, -inf }
 0x274   :  { %v671_v60 = vpop.f32.mrf.mxu0  ;;  %721 = vmax.xlane.f32.xlu1 %v1534_v55  ;;  %723 = vmax.xlane.f32.xlu0 %v1543_v59 }
 0x275   :  { %v1549_v61 = vsel %vm843_vm3, %v677_v58, 0.0  ;;  %v672_v62 = vadd.f32 %v1407_v2, %v671_v60  ;;  %v1568_v4 = vsel %vm682_vm4, %v677_v58, -inf }
 0x277   :  { %v1558_v0 = vsel %vm843_vm3, %v672_v62, 0.0  ;;  %v1562_v3 = vsel %vm682_vm4, %v672_v62, -inf }
 0x278   :  { %725 = vmax.xlane.f32.xlu1 %v1554_v63  ;;  %727 = vmax.xlane.f32.xlu0 %v1562_v3 }
 0x27c   :  { %729 = vmax.xlane.f32.xlu1 %v1568_v4 }
 0x2e5   :  { %v700_v2 = vpop.xlane.xlu0 %699 }
 0x2e6   :  { %v731_v5 = vsub.f32 %v1420_v10, %v700_v2 }
 0x2e8   :  { %v747_v7 = vmul.f32 1.442695, %v731_v5 }
 0x2e9   :  { %v704_v8 = vpop.xlane.xlu1 %703  ;;  %v702_v9 = vpop.xlane.xlu0 %701 }
 0x2ea   :  { %1141 = vpow2.f32 %v747_v7  ;;  %v733_v12 = vsub.f32 %v1439_v18, %v704_v8  ;;  %v732_v14 = vsub.f32 %v1443_v19, %v702_v9 }
 0x2ec   :  { %v751_v15 = vmul.f32 1.442695, %v733_v12  ;;  %v749_v17 = vmul.f32 1.442695, %v732_v14 }
 0x2ed   :  { %v706_v20 = vpop.xlane.xlu1 %705  ;;  %v708_v22 = vpop.xlane.xlu0 %707 }
 0x2ee   :  { %1143 = vpow2.f32 %v751_v15  ;;  %v734_v1 = vsub.f32 %v1459_v26, %v706_v20  ;;  %v735_v23 = vsub.f32 %v1463_v27, %v708_v22 }
 0x2ef   :  { %1145 = vpow2.f32 %v749_v17 }
 0x2f0   :  { %v753_v25 = vmul.f32 1.442695, %v734_v1  ;;  %v755_v10 = vmul.f32 1.442695, %v735_v23 }
 0x2f1   :  { %v710_v28 = vpop.xlane.xlu1 %709  ;;  %v712_v30 = vpop.xlane.xlu0 %711 }
 0x2f2   :  { %1147 = vpow2.f32 %v753_v25  ;;  %v736_v31 = vsub.f32 %v1479_v34, %v710_v28  ;;  %v737_v18 = vsub.f32 %v1483_v35, %v712_v30 }
 0x2f3   :  { %1149 = vpow2.f32 %v755_v10 }
 0x2f4   :  { %v757_v19 = vmul.f32 1.442695, %v736_v31  ;;  %v759_v33 = vmul.f32 1.442695, %v737_v18 }
 0x2f5   :  { %v714_v36 = vpop.xlane.xlu1 %713  ;;  %v716_v38 = vpop.xlane.xlu0 %715 }
 0x2f6   :  { %1151 = vpow2.f32 %v757_v19  ;;  %v738_v26 = vsub.f32 %v1494_v39, %v714_v36  ;;  %v739_v27 = vsub.f32 %v1503_v43, %v716_v38 }
 0x2f7   :  { %v1580_v40 = vpop.eup %1141  ;;  %1153 = vpow2.f32 %v759_v33 }
 0x2f8   :  { %v761_v42 = vmul.f32 1.442695, %v738_v26  ;;  %v763_v44 = vmul.f32 1.442695, %v739_v27  ;;  %779 = vadd.xlane.f32.xlu0 %v1580_v40 }
 0x2f9   :  { %v718_v34 = vpop.xlane.xlu1 %717  ;;  %v720_v46 = vpop.xlane.xlu0 %719 }
 0x2fa   :  { %1155 = vpow2.f32 %v761_v42  ;;  %v740_v35 = vsub.f32 %v1514_v47, %v718_v34  ;;  %v741_v48 = vsub.f32 %v1523_v51, %v720_v46 }
 0x2fb   :  { %v1585_v50 = vpop.eup %1143  ;;  %1157 = vpow2.f32 %v763_v44 }
 0x2fc   :  { %v1587_v39 = vpop.eup %1145  ;;  %v765_v43 = vmul.f32 1.442695, %v740_v35  ;;  %v767_v52 = vmul.f32 1.442695, %v741_v48  ;;  %783 = vadd.xlane.f32.xlu0 %v1585_v50 }
 0x2fd   :  { %781 = vadd.xlane.f32.xlu1 %v1587_v39  ;;  %v722_v54 = vpop.xlane.xlu1 %721  ;;  %v724_v56 = vpop.xlane.xlu0 %723 }
 0x2fe   :  { %1159 = vpow2.f32 %v765_v43  ;;  %v742_v58 = vsub.f32 %v1534_v55, %v722_v54  ;;  %v743_v47 = vsub.f32 %v1543_v59, %v724_v56 }
 0x2ff   :  { %v1593_v60 = vpop.eup %1147  ;;  %1161 = vpow2.f32 %v767_v52 }
 0x300   :  { %v1595_v51 = vpop.eup %1149  ;;  %v769_v62 = vmul.f32 1.442695, %v742_v58  ;;  %v771_v2 = vmul.f32 1.442695, %v743_v47 }
 0x301   :  { %785 = vadd.xlane.f32.xlu1 %v1593_v60  ;;  %787 = vadd.xlane.f32.xlu0 %v1595_v51  ;;  %v726_v5 = vpop.xlane.xlu1 %725  ;;  %v728_v7 = vpop.xlane.xlu0 %727 }
 0x302   :  { %1163 = vpow2.f32 %v769_v62  ;;  %v744_v8 = vsub.f32 %v1554_v63, %v726_v5  ;;  %v745_v55 = vsub.f32 %v1562_v3, %v728_v7 }
 0x303   :  { %v1601_v9 = vpop.eup %1151  ;;  %1165 = vpow2.f32 %v771_v2 }
 0x304   :  { %v1603_v59 = vpop.eup %1153  ;;  %v773_v12 = vmul.f32 1.442695, %v744_v8  ;;  %v775_v14 = vmul.f32 1.442695, %v745_v55 }
 0x305   :  { %789 = vadd.xlane.f32.xlu1 %v1601_v9  ;;  %791 = vadd.xlane.f32.xlu0 %v1603_v59  ;;  %v730_v15 = vpop.xlane.xlu1 %729 }
 0x306   :  { %1167 = vpow2.f32 %v773_v12  ;;  %v746_v17 = vsub.f32 %v1568_v4, %v730_v15 }
 0x307   :  { %v1608_v20 = vpop.eup %1155  ;;  %1169 = vpow2.f32 %v775_v14 }
 0x308   :  { %v1610_v63 = vpop.eup %1157  ;;  %v777_v3 = vmul.f32 1.442695, %v746_v17 }
 0x309   :  { %793 = vadd.xlane.f32.xlu1 %v1608_v20  ;;  %795 = vadd.xlane.f32.xlu0 %v1610_v63 }
 0x30a   :  { %1171 = vpow2.f32 %v777_v3 }
 0x30b   :  { %v1614_v22 = vpop.eup %1159 }
 0x30c   :  { %v1616_v1 = vpop.eup %1161 }
 0x30d   :  { %797 = vadd.xlane.f32.xlu1 %v1614_v22  ;;  %799 = vadd.xlane.f32.xlu0 %v1616_v1 }
 0x30f   :  { %v1620_v4 = vpop.eup %1163 }
 0x310   :  { %v1622_v23 = vpop.eup %1165 }
 0x311   :  { %801 = vadd.xlane.f32.xlu1 %v1620_v4  ;;  %803 = vadd.xlane.f32.xlu0 %v1622_v23 }
 0x313   :  { %v1626_v25 = vpop.eup %1167 }
 0x314   :  { %v1628_v10 = vpop.eup %1169 }
 0x315   :  { %805 = vadd.xlane.f32.xlu1 %v1626_v25  ;;  %807 = vadd.xlane.f32.xlu0 %v1628_v10 }
 0x317   :  { %v1632_v28 = vpop.eup %1171 }
 0x319   :  { %809 = vadd.xlane.f32.xlu1 %v1632_v28 }
 0x381   :  { %v780_v30 = vpop.xlane.xlu0 %779 }
 0x382   :  { %1173 = vrcp.f32 %v780_v30 }
 0x385   :  { %v784_v31 = vpop.xlane.xlu0 %783 }
 0x386   :  { %v782_v18 = vpop.xlane.xlu1 %781  ;;  %1175 = vrcp.f32 %v784_v31 }
 0x387   :  { %1177 = vrcp.f32 %v782_v18 }
 0x38a   :  { %v786_v19 = vpop.xlane.xlu1 %785  ;;  %v788_v33 = vpop.xlane.xlu0 %787 }
 0x38b   :  { %1179 = vrcp.f32 %v786_v19 }
 0x38c   :  { %1181 = vrcp.f32 %v788_v33 }
 0x38e   :  { %v790_v38 = vpop.xlane.xlu1 %789  ;;  %v792_v34 = vpop.xlane.xlu0 %791 }
 0x38f   :  { %v1174_v36 = vpop.eup %1173  ;;  %1183 = vrcp.f32 %v790_v38 }
 0x390   :  { %v827_v26 = vmul.f32 %v1174_v36, %v1580_v40  ;;  %1185 = vrcp.f32 %v792_v34 }
 0x392   :  { %v860_v27 = vadd.f32 %v1424_v11, %v827_v26  ;;  %v794_v52 = vpop.xlane.xlu1 %793  ;;  %v796_v56 = vpop.xlane.xlu0 %795 }
 0x393   :  { %v1176_v42 = vpop.eup %1175  ;;  %1187 = vrcp.f32 %v794_v52 }
 0x394   :  { %v1178_v44 = vpop.eup %1177  ;;  %876 = vxpose.xlu0.b32.start [1/16] (narrow) %v860_v27, 8  ;;  %v829_v48 = vmul.f32 %v1176_v42, %v1585_v50  ;;  %1189 = vrcp.f32 %v796_v56 }
 0x395   :  { %v828_v46 = vmul.f32 %v1178_v44, %v1587_v39 }
 0x396   :  { %v862_v40 = vadd.f32 %v1434_v16, %v829_v48  ;;  %v800_v16 = vpop.xlane.xlu0 %799 }
 0x397   :  { %v861_v35 = vadd.f32 %v1413_v6, %v828_v46  ;;  %v798_v6 = vpop.xlane.xlu1 %797 }
 0x398   :  { %v1180_v43 = vpop.eup %1179  ;;  %1191 = vrcp.f32 %v798_v6 }
 0x399   :  { %877 = vxpose.xlu0.b32.cont [2/16] (narrow) %v861_v35, 8  ;;  %v830_v11 = vmul.f32 %v1180_v43, %v1593_v60  ;;  %v1182_v54 = vpop.eup %1181  ;;  %1193 = vrcp.f32 %v800_v16 }
 0x39a   :  { %v831_v39 = vmul.f32 %v1182_v54, %v1595_v51 }
 0x39b   :  { %v863_v58 = vadd.f32 %v1429_v13, %v830_v11  ;;  %v802_v13 = vpop.xlane.xlu1 %801 }
 0x39c   :  { %v1184_v47 = vpop.eup %1183  ;;  %v864_v50 = vadd.f32 %v1454_v24, %v831_v39  ;;  %1195 = vrcp.f32 %v802_v13  ;;  %v804_v24 = vpop.xlane.xlu0 %803 }
 0x39d   :  { %878 = vxpose.xlu0.b32.cont [3/16] (narrow) %v862_v40, 8  ;;  %v832_v62 = vmul.f32 %v1184_v47, %v1601_v9  ;;  %v1186_v2 = vpop.eup %1185  ;;  %1197 = vrcp.f32 %v804_v24 }
 0x39e   :  { %v833_v5 = vmul.f32 %v1186_v2, %v1603_v59 }
 0x39f   :  { %v865_v60 = vadd.f32 %v1449_v21, %v832_v62  ;;  %v806_v21 = vpop.xlane.xlu1 %805 }
 0x3a0   :  { %v1188_v7 = vpop.eup %1187  ;;  %v866_v51 = vadd.f32 %v1474_v32, %v833_v5  ;;  %1199 = vrcp.f32 %v806_v21  ;;  %v808_v32 = vpop.xlane.xlu0 %807 }
 0x3a1   :  { %879 = vxpose.xlu0.b32.cont [4/16] (narrow) %v863_v58, 8  ;;  %v834_v8 = vmul.f32 %v1188_v7, %v1608_v20  ;;  %v1190_v55 = vpop.eup %1189  ;;  %1201 = vrcp.f32 %v808_v32 }
 0x3a2   :  { %v835_v12 = vmul.f32 %v1190_v55, %v1610_v63 }
 0x3a3   :  { %v867_v9 = vadd.f32 %v1469_v29, %v834_v8  ;;  %v810_v29 = vpop.xlane.xlu1 %809 }
 0x3a4   :  { %v868_v59 = vadd.f32 %v1498_v41, %v835_v12  ;;  %1203 = vrcp.f32 %v810_v29 }
 0x3a5   :  { %880 = vxpose.xlu0.b32.cont [5/16] (narrow) %v864_v50, 8  ;;  %v1192_v14 = vpop.eup %1191 }
 0x3a6   :  { %v836_v15 = vmul.f32 %v1192_v14, %v1614_v22  ;;  %v1194_v17 = vpop.eup %1193 }
 0x3a7   :  { %v837_v3 = vmul.f32 %v1194_v17, %v1616_v1 }
 0x3a8   :  { %v869_v20 = vadd.f32 %v1489_v37, %v836_v15 }
 0x3a9   :  { %881 = vxpose.xlu0.b32.cont [6/16] (narrow) %v865_v60, 8  ;;  %v1196_v30 = vpop.eup %1195  ;;  %v870_v63 = vadd.f32 %v1518_v49, %v837_v3 }
 0x3aa   :  { %v838_v31 = vmul.f32 %v1196_v30, %v1620_v4  ;;  %v1198_v18 = vpop.eup %1197 }
 0x3ab   :  { %v839_v22 = vmul.f32 %v1198_v18, %v1622_v23 }
 0x3ac   :  { %v871_v41 = vadd.f32 %v1509_v45, %v838_v31 }
 0x3ad   :  { %882 = vxpose.xlu0.b32.cont [7/16] (narrow) %v866_v51, 8  ;;  %v1200_v19 = vpop.eup %1199  ;;  %v872_v37 = vadd.f32 %v1538_v57, %v839_v22 }
 0x3ae   :  { %v840_v1 = vmul.f32 %v1200_v19, %v1626_v25  ;;  %v1202_v33 = vpop.eup %1201 }
 0x3af   :  { %v841_v49 = vmul.f32 %v1202_v33, %v1628_v10 }
 0x3b0   :  { %v873_v36 = vadd.f32 %v1529_v53, %v840_v1 }
 0x3b1   :  { %883 = vxpose.xlu0.b32.cont [8/16] (narrow) %v867_v9, 8  ;;  %v1204_v38 = vpop.eup %1203  ;;  %v874_v4 = vadd.f32 %v1558_v0, %v841_v49 }
 0x3b2   :  { %v842_v45 = vmul.f32 %v1204_v38, %v1632_v28 }
 0x3b4   :  { %v875_v23 = vadd.f32 %v1549_v61, %v842_v45 }
 0x3b5   :  { %884 = vxpose.xlu0.b32.cont [9/16] (narrow) %v868_v59, 8 }
 0x3b9   :  { %885 = vxpose.xlu0.b32.cont [10/16] (narrow) %v869_v20, 8 }
 0x3bd   :  { %886 = vxpose.xlu0.b32.cont [11/16] (narrow) %v870_v63, 8 }
 0x3c1   :  { %887 = vxpose.xlu0.b32.cont [12/16] (narrow) %v871_v41, 8 }
 0x3c5   :  { %888 = vxpose.xlu0.b32.cont [13/16] (narrow) %v872_v37, 8 }
 0x3c9   :  { %889 = vxpose.xlu0.b32.cont [14/16] (narrow) %v873_v36, 8 }
 0x3cd   :  { %890 = vxpose.xlu0.b32.cont [15/16] (narrow) %v874_v4, 8 }
 0x3d1   :  { %891 = vxpose.xlu0.b32.end [16/16] (narrow) %v875_v23, 8 }
 0x411   :  { %v892_v57 = vpop.trf.xlu0 }
 0x412   :  { %908 = vst [vmem:[#allocation2] sm:$0xff] %v892_v57 }
 0x413   :  { %1216 = shalt.err (!%p1213_p4)
}
 0x414   :  { %918 = dma.vmem_to_hbm [thread:$0]  %s916_s28, 128, %s1675_s5, [#allocation3]  }
 0x415   :  { %1225 = dma.done.wait [#allocation3], 128  }
 0x416   :  { %1226 = vsyncadd [#allocation3], 4294967168 }
 0x417   :  { %922 = vsyncpa [#allocation3], 1 }

</bundles_post_ra>
